<compile_context>
chip_gen: v6e
topology: v6e:2x2x1
jax: 0.10.0
libtpu: 0.0.40
codegen_flags: <defaults>
</compile_context>

<pallas_src>
import math

import jax
import jax.numpy as jnp
from jax.experimental import pallas as pl
from jax.experimental.pallas import tpu as pltpu


def _round_up(x, m):
    return (x + m - 1) // m * m


# ---------------------------------------------------------------------------
# Kernel bodies.
# Grid: (B, N_pad // tm, N_pad // tk) = (batch, output-row tile, reduction tile)
# The reduction axis k is innermost -> accumulator init/finalize via pl.when,
# and the weight / bias block index (constant) never changes between steps.
# ---------------------------------------------------------------------------
def _gcn_kernel_wx_first(x_ref, adj_ref, w_ref, b_ref, o_ref, acc_ref):
    """out = adj @ (x @ W) -- used when F_out <= F_in (cheaper N^2 contraction)."""
    k = pl.program_id(2)

    @pl.when(k == 0)
    def _():
        acc_ref[...] = jnp.zeros_like(acc_ref)

    # support slice for this k tile: (tk, Fin) @ (Fin, Fout) -> (tk, Fout)
    support = jnp.dot(x_ref[...], w_ref[...], preferred_element_type=jnp.float32)
    # (tm, tk) @ (tk, Fout) -> (tm, Fout)
    acc_ref[...] += jnp.dot(adj_ref[...], support, preferred_element_type=jnp.float32)

    @pl.when(k == pl.num_programs(2) - 1)
    def _():
        o_ref[...] = (acc_ref[...] + b_ref[...]).astype(o_ref.dtype)


def _gcn_kernel_adj_first(x_ref, adj_ref, w_ref, b_ref, o_ref, acc_ref):
    """out = (adj @ x) @ W -- used when F_in < F_out (cheaper N^2 contraction)."""
    k = pl.program_id(2)

    @pl.when(k == 0)
    def _():
        acc_ref[...] = jnp.zeros_like(acc_ref)

    # (tm, tk) @ (tk, Fin) -> (tm, Fin)
    acc_ref[...] += jnp.dot(adj_ref[...], x_ref[...], preferred_element_type=jnp.float32)

    @pl.when(k == pl.num_programs(2) - 1)
    def _():
        out = jnp.dot(acc_ref[...], w_ref[...], preferred_element_type=jnp.float32)
        o_ref[...] = (out + b_ref[...]).astype(o_ref.dtype)


def gcn_forward(x, adj, weight, bias=None, *, tile_n=None):
    """Pallas GCN forward.

    x:      (B, N, F_in)  float32
    adj:    (B, N, N)     float32
    weight: (F_in, F_out) float32
    bias:   (1, 1, F_out) float32 or None
    returns (B, N, F_out) float32
    """
    B, N, Fin = x.shape
    Fout = weight.shape[1]
    assert weight.shape[0] == Fin
    assert adj.shape == (B, N, N)

    # Cheaper association: put the dominant N x N contraction at K = min(Fin, Fout).
    adj_first = Fin < Fout

    # Lane-dense padding of feature dims (full 128-wide vregs / MXU pushes).
    Fin_p = _round_up(Fin, 128)
    Fout_p = _round_up(Fout, 128)

    # N tiling: 128-granule (native on v5e, fine on v6e/v7x), capped at 512 so
    # total VMEM residency (~3-4 MiB at tm=tk=512) fits v7x's 64 MiB with room
    # for double-buffering.
    if tile_n is None:
        tile_n = min(512, _round_up(N, 128))
    tm = tk = tile_n
    N_pad = _round_up(N, tile_n)

    # Zero-pad inputs; padded rows/cols contribute exactly zero and the padded
    # output region is sliced off below.
    xp = x
    if (N_pad, Fin_p) != (N, Fin):
        xp = jnp.pad(x, ((0, 0), (0, N_pad - N), (0, Fin_p - Fin)))
    adjp = adj
    if N_pad != N:
        adjp = jnp.pad(adj, ((0, 0), (0, N_pad - N), (0, N_pad - N)))
    wp = weight
    if (Fin_p, Fout_p) != (Fin, Fout):
        wp = jnp.pad(weight, ((0, Fin_p - Fin), (0, Fout_p - Fout)))
    if bias is None:
        bp = jnp.zeros((1, Fout_p), x.dtype)
    else:
        bp = jnp.pad(bias.reshape(1, Fout), ((0, 0), (0, Fout_p - Fout)))

    grid = (B, N_pad // tm, N_pad // tk)

    x_spec = pl.BlockSpec((None, tk, Fin_p), lambda b, i, k: (b, k, 0))
    adj_spec = pl.BlockSpec((None, tm, tk), lambda b, i, k: (b, i, k))
    w_spec = pl.BlockSpec((Fin_p, Fout_p), lambda b, i, k: (0, 0))
    b_spec = pl.BlockSpec((1, Fout_p), lambda b, i, k: (0, 0))
    o_spec = pl.BlockSpec((None, tm, Fout_p), lambda b, i, k: (b, i, 0))

    if adj_first:
        kernel = _gcn_kernel_adj_first
        acc_scratch = pltpu.VMEM((tm, Fin_p), jnp.float32)
    else:
        kernel = _gcn_kernel_wx_first
        acc_scratch = pltpu.VMEM((tm, Fout_p), jnp.float32)

    flops = 2.0 * B * N_pad * N_pad * min(Fin_p, Fout_p) + 2.0 * B * N_pad * Fin_p * Fout_p
    bytes_accessed = 4.0 * (adjp.size + xp.size + wp.size + B * N_pad * Fout_p)
    cost = pl.CostEstimate(
        flops=int(flops), transcendentals=0, bytes_accessed=int(bytes_accessed)
    )

    out = pl.pallas_call(
        kernel,
        out_shape=jax.ShapeDtypeStruct((B, N_pad, Fout_p), x.dtype),
        grid_spec=pltpu.PrefetchScalarGridSpec(
            num_scalar_prefetch=0,
            grid=grid,
            in_specs=[x_spec, adj_spec, w_spec, b_spec],
            out_specs=o_spec,
            scratch_shapes=[acc_scratch],
        ),
        compiler_params=pltpu.CompilerParams(
            dimension_semantics=("parallel", "parallel", "arbitrary"),
            vmem_limit_bytes=48 * 1024 * 1024,
        ),
        cost_estimate=cost,
    )(xp, adjp, wp, bp)

    if (N_pad, Fout_p) != (N, Fout):
        out = out[:, :N, :Fout]
    return out


def init_gcn_params(key, in_features, out_features, use_bias=False):
    """Deterministic re-implementation of GraphConvolution.reset_parameters."""
    stdv = 1.0 / math.sqrt(out_features)
    kw, kb = jax.random.split(key)
    weight = jax.random.uniform(
        kw, (in_features, out_features), jnp.float32, minval=-stdv, maxval=stdv
    )
    bias = None
    if use_bias:
        bias = jax.random.uniform(
            kb, (1, 1, out_features), jnp.float32, minval=-stdv, maxval=stdv
        )
    return weight, bias


if __name__ == "__main__":
    key = jax.random.PRNGKey(0)
    k_x, k_adj, k_p, k_x2, k_adj2 = jax.random.split(key, 5)

    B, N, F_in, F_out = 2, 16, 8, 32
    x = jax.random.normal(k_x, (B, N, F_in), jnp.float32)
    adj = jax.random.normal(k_adj, (B, N, N), jnp.float32)

    # --- bias=False path (module default); F_in < F_out -> adj-first kernel ---
    weight, _ = init_gcn_params(k_p, F_in, F_out, use_bias=False)
    out = jax.block_until_ready(gcn_forward(x, adj, weight, bias=None))
    ref = jnp.matmul(adj, jnp.matmul(x, weight))
    assert out.shape == (B, N, F_out)
    assert jnp.allclose(out, ref, atol=1e-3, rtol=1e-3)

    # --- bias=True path ---
    weight_b, bias_b = init_gcn_params(k_p, F_in, F_out, use_bias=True)
    out_b = jax.block_until_ready(gcn_forward(x, adj, weight_b, bias=bias_b))
    ref_b = jnp.matmul(adj, jnp.matmul(x, weight_b)) + bias_b
    assert jnp.allclose(out_b, ref_b, atol=1e-3, rtol=1e-3)

    # --- F_in > F_out exercises the (x @ W)-first kernel variant ---
    w2, b2 = init_gcn_params(k_p, F_out, F_in, use_bias=True)  # in=32, out=8
    x2 = jax.random.normal(k_x2, (B, N, F_out), jnp.float32)
    out2 = jax.block_until_ready(gcn_forward(x2, adj, w2, bias=b2))
    ref2 = jnp.matmul(adj, jnp.matmul(x2, w2)) + b2
    assert jnp.allclose(out2, ref2, atol=1e-3, rtol=1e-3)

    # --- larger N with a forced 128 tile exercises the tiled reduction path ---
    N2 = 256
    x3 = jax.random.normal(k_x2, (B, N2, F_in), jnp.float32)
    adj3 = jax.random.normal(k_adj2, (B, N2, N2), jnp.float32)
    out3 = jax.block_until_ready(gcn_forward(x3, adj3, weight, bias=None, tile_n=128))
    ref3 = jnp.matmul(adj3, jnp.matmul(x3, weight))
    assert jnp.allclose(out3, ref3, atol=1e-3, rtol=1e-3)

    print("KERNEL_OK")
</pallas_src>

<mosaic_0001>
module attributes {stable_mosaic.version = 11 : i64} {
  func.func @_gcn_kernel_adj_first(%arg0: i32, %arg1: i32, %arg2: i32, %arg3: memref<1x128x128xf32, #tpu.memory_space<vmem>>, %arg4: memref<1x128x128xf32, #tpu.memory_space<vmem>>, %arg5: memref<128x128xf32, #tpu.memory_space<vmem>>, %arg6: memref<1x128xf32, #tpu.memory_space<vmem>>, %arg7: memref<1x128x128xf32, #tpu.memory_space<vmem>>, %arg8: memref<128x128xf32, #tpu.memory_space<vmem>>) attributes {dimension_semantics = [#tpu.dimension_semantics<parallel>, #tpu.dimension_semantics<parallel>, #tpu.dimension_semantics<arbitrary>], iteration_bounds = array<i64: 2, 1, 1>, scalar_prefetch = 0 : i64, scratch_operands = 1 : i64, tpu.core_type = #tpu.core_type<tc>, window_params = [{transform_indices = @transform_0, window_bounds = array<i64: 1, 128, 128>}, {transform_indices = @transform_1, window_bounds = array<i64: 1, 128, 128>}, {pipeline_mode = #tpu.pipeline_mode<synchronous>, transform_indices = @transform_2, window_bounds = array<i64: 128, 128>}, {pipeline_mode = #tpu.pipeline_mode<synchronous>, transform_indices = @transform_3, window_bounds = array<i64: 1, 128>}, {transform_indices = @transform_4, window_bounds = array<i64: 1, 128, 128>}]} {
    %c0_i32 = arith.constant 0 : i32
    %0 = arith.cmpi eq, %arg2, %c0_i32 : i32
    %1 = arith.extui %0 : i1 to i32
    %c0_i32_0 = arith.constant 0 : i32
    %2 = arith.cmpi ne, %1, %c0_i32_0 : i32
    scf.if %2 {
      %cst_12 = arith.constant 0.000000e+00 : f32
      %14 = vector.broadcast %cst_12 : f32 to vector<128x128xf32>
      %c0_13 = arith.constant 0 : index
      %c0_14 = arith.constant 0 : index
      %15 = vector.load %arg8[%c0_13, %c0_14] : memref<128x128xf32, #tpu.memory_space<vmem>>, vector<128x128xf32>
      tpu.vector_store %arg8[%c0_13, %c0_14], %14 {strides = array<i32>} : memref<128x128xf32, #tpu.memory_space<vmem>>, vector<128x128xf32>,
    } else {
    }
    %c0 = arith.constant 0 : index
    %c0_1 = arith.constant 0 : index
    %3 = vector.load %arg8[%c0, %c0_1] : memref<128x128xf32, #tpu.memory_space<vmem>>, vector<128x128xf32>
    %c0_2 = arith.constant 0 : index
    %c0_3 = arith.constant 0 : index
    %c0_4 = arith.constant 0 : index
    %4 = vector.load %arg4[%c0_2, %c0_3, %c0_4] : memref<1x128x128xf32, #tpu.memory_space<vmem>>, vector<1x128x128xf32>
    %5 = vector.shape_cast %4 : vector<1x128x128xf32> to vector<128x128xf32>
    %c0_5 = arith.constant 0 : index
    %c0_6 = arith.constant 0 : index
    %c0_7 = arith.constant 0 : index
    %6 = vector.load %arg3[%c0_5, %c0_6, %c0_7] : memref<1x128x128xf32, #tpu.memory_space<vmem>>, vector<1x128x128xf32>
    %7 = vector.shape_cast %6 : vector<1x128x128xf32> to vector<128x128xf32>
    %cst = arith.constant dense<0.000000e+00> : vector<128x128xf32>
    %8 = tpu.matmul %5, %7, %cst {dimension_numbers = #tpu.dot_dimension_numbers<[1], [0], [0], [1], [0, 0, 1, 1], [], []>} : vector<128x128xf32>, vector<128x128xf32>, vector<128x128xf32> -> vector<128x128xf32>
    %9 = arith.addf %3, %8 : vector<128x128xf32>
    %c0_8 = arith.constant 0 : index
    %c0_9 = arith.constant 0 : index
    %10 = vector.load %arg8[%c0_8, %c0_9] : memref<128x128xf32, #tpu.memory_space<vmem>>, vector<128x128xf32>
    tpu.vector_store %arg8[%c0_8, %c0_9], %9 {strides = array<i32>} : memref<128x128xf32, #tpu.memory_space<vmem>>, vector<128x128xf32>,
    %c0_i32_10 = arith.constant 0 : i32
    %11 = arith.cmpi eq, %arg2, %c0_i32_10 : i32
    %12 = arith.extui %11 : i1 to i32
    %c0_i32_11 = arith.constant 0 : i32
    %13 = arith.cmpi ne, %12, %c0_i32_11 : i32
    scf.if %13 {
      %c0_12 = arith.constant 0 : index
      %c0_13 = arith.constant 0 : index
      %14 = vector.load %arg8[%c0_12, %c0_13] : memref<128x128xf32, #tpu.memory_space<vmem>>, vector<128x128xf32>
      %c0_14 = arith.constant 0 : index
      %c0_15 = arith.constant 0 : index
      %15 = vector.load %arg5[%c0_14, %c0_15] : memref<128x128xf32, #tpu.memory_space<vmem>>, vector<128x128xf32>
      %cst_16 = arith.constant dense<0.000000e+00> : vector<128x128xf32>
      %16 = tpu.matmul %14, %15, %cst_16 {dimension_numbers = #tpu.dot_dimension_numbers<[1], [0], [0], [1], [0, 0, 1, 1], [], []>} : vector<128x128xf32>, vector<128x128xf32>, vector<128x128xf32> -> vector<128x128xf32>
      %c0_17 = arith.constant 0 : index
      %c0_18 = arith.constant 0 : index
      %17 = vector.load %arg6[%c0_17, %c0_18] : memref<1x128xf32, #tpu.memory_space<vmem>>, vector<1x128xf32>
      %18 = vector.broadcast %17 : vector<1x128xf32> to vector<128x128xf32>
      %19 = arith.addf %16, %18 : vector<128x128xf32>
      %c0_19 = arith.constant 0 : index
      %c0_20 = arith.constant 0 : index
      %c0_21 = arith.constant 0 : index
      %20 = vector.load %arg7[%c0_19, %c0_20, %c0_21] : memref<1x128x128xf32, #tpu.memory_space<vmem>>, vector<1x128x128xf32>
      %21 = vector.shape_cast %20 : vector<1x128x128xf32> to vector<128x128xf32>
      %22 = vector.shape_cast %19 : vector<128x128xf32> to vector<1x128x128xf32>
      tpu.vector_store %arg7[%c0_19, %c0_20, %c0_21], %22 {strides = array<i32>} : memref<1x128x128xf32, #tpu.memory_space<vmem>>, vector<1x128x128xf32>,
    } else {
    }
    return
  }
  func.func @transform_0(%arg0: i32, %arg1: i32, %arg2: i32) -> (i32, i32, i32) {
    %c0_i32 = arith.constant 0 : i32
    %c0_i32_0 = arith.constant 0 : i32
    return %arg0, %arg2, %c0_i32 : i32, i32, i32
  }
  func.func @transform_1(%arg0: i32, %arg1: i32, %arg2: i32) -> (i32, i32, i32) {
    %c0_i32 = arith.constant 0 : i32
    return %arg0, %arg1, %arg2 : i32, i32, i32
  }
  func.func @transform_2(%arg0: i32, %arg1: i32, %arg2: i32) -> (i32, i32) {
    %c0_i32 = arith.constant 0 : i32
    %c0_i32_0 = arith.constant 0 : i32
    %c0_i32_1 = arith.constant 0 : i32
    return %c0_i32, %c0_i32_0 : i32, i32
  }
  func.func @transform_3(%arg0: i32, %arg1: i32, %arg2: i32) -> (i32, i32) {
    %c0_i32 = arith.constant 0 : i32
    %c0_i32_0 = arith.constant 0 : i32
    %c0_i32_1 = arith.constant 0 : i32
    return %c0_i32, %c0_i32_0 : i32, i32
  }
  func.func @transform_4(%arg0: i32, %arg1: i32, %arg2: i32) -> (i32, i32, i32) {
    %c0_i32 = arith.constant 0 : i32
    %c0_i32_0 = arith.constant 0 : i32
    return %arg0, %arg1, %c0_i32 : i32, i32, i32
  }
}

</mosaic_0001>

<bundles_post_ra>
// kernel: tpu_custom_call.1
= control target key start
LH: loop header
LB: loop body
LE: loop exit
PB: predicated region body
PF: predicated region fallthrough
CT: control target
= control target key end

     0   :  { %s1652_s0 = inlined_call_operand.hbm [shape: f32[2,128,128], index: 0, kind: input, shape index: {}]   ;;  %s1653_s1 = inlined_call_operand.hbm [shape: f32[2,128,128], index: 1, kind: input, shape index: {}]   ;;  %s1654_s2 = inlined_call_operand.hbm [shape: f32[128,128], index: 2, kind: input, shape index: {}]   ;;  %s1655_s3 = inlined_call_operand.vmem [shape: f32[1,128], index: 3, kind: input, shape index: {}]   ;;  %s1656_s4 = inlined_call_operand.hbm [shape: f32[2,128,128], index: 4, kind: output, shape index: {}]  }
   0x1   :  { %1663 = sst [smem:[#allocation16_spill]] %s1654_s2 }
   0x2   :  { %9 = vsyncpa [#allocation4], 0 }
   0x3   :  { %11 = vsyncpa [#allocation4 + $0x1], 0 }
   0x4   :  { %12 = vsyncpa [#allocation7], 0 }
   0x5   :  { %14 = vsyncpa [#allocation7 + $0x1], 0 }
   0x6   :  { %15 = vsyncpa [#allocation5], 0 }
   0x7   :  { %17 = vsyncpa [#allocation5 + $0x1], 0  ;;  %s1383_s15 = smov 0   ;;  %s1385_s16 = smov 0  }
   0x8   :  { %s1387_s17 = smov 0   ;;  %s1389_s18 = smov 0  }
   0x9   :  { %s1391_s19 = smov 0   ;;  %s1393_s20 = smov 0  }
   0xa LB: > { %1664 = sst [smem:[#allocation14_spill]] %s1344_s19  ;;  %s1414_s21 = sadd.s32 4294967295, %s1348_s20   ;;  %s1348_s20 = sphi %s1393_s20, %s23_s20   ;;  %s1344_s19 = sphi %s1391_s19, %s1680_s19   ;;  %s1340_s18 = sphi %s1389_s18, %s1679_s18   ;;  %s1336_s17 = sphi %s1387_s17, %s1683_s17   ;;  %s1332_s16 = sphi %s1385_s16, %s1682_s16   ;;  %s1328_s15 = sphi %s1383_s15, %s1681_s15  }
   0xb   : > { %s896_s22 = sadd.s32 4294967294, %s1348_s20   ;;  %p64_p0 = scmp.ne.s32.totalorder %s1332_s16, %s1328_s15 }
   0xc   : > { %p65_p1 = scmp.eq.s32.totalorder %s1414_s21, 0  ;;  %p168_p3 = scmp.eq.s32.totalorder %s896_s22, 1 }
   0xd   : > { %p897_p5 = scmp.ge.s32.totalorder %s1348_s20, 1  ;;  %p175_p7 = scmp.lt.s32.totalorder %s1348_s20, 3 }
   0xe   : > { %p1423_p4 = por %p65_p1, %p64_p0  ;;  %p1428_p6 = por %p168_p3, %p64_p0 }
   0xf   : > { %p1433_p8 = pnand %p897_p5, %p175_p7  ;;  %s1350_s26 = smov [#allocation8]  }
  0x10   : > { %s1666_s24 = scalar_select %p1428_p6, 1, 0 }
  0x11   : > { %s187_s27 = sshll.u32 %s1350_s26, 4  ;;  %p1106_p9 = pneg %p1433_p8  ;;  %s188_s27 = int_to_ptr.vmem [resolvable:$true] %s187_s27 }
  0x12   : > { %s42_s29 = sadd.s32 1, %s1344_s19  ;;  %s1189_s30 = scalar_lea.vmem %s188_s27, 2048 }
  0x13   : > { %p1442_p11 = pnand %p1106_p9, %p65_p1  ;;  %p1190_p13 = scmp.ne.s32.totalorder %s188_s27, %s1189_s30 }
  0x14   : > { %p1197_p5 = scmp.lt.s32.totalorder %s188_s27, %s188_s27  ;;  %p1198_p7 = scmp.lt.s32.totalorder %s1189_s30, %s1189_s30 }
  0x15   : > { %p1180_p12 = pneg %p1442_p11 }
  0x16   : > { %p1199_p2 = por %p1198_p7, %p1197_p5 }
  0x17   : > { %p1192_p0 = pnand %p1190_p13, %p1180_p12 }
  0x19   : > { %p1193_p3 = pneg %p1192_p0 }
  0x1b   : > { %p1200_p6 = pnand %p1199_p2, %p1193_p3 }
  0x1d   : > { %1203 = shalt.err (!%p1200_p6)
}
  0x1e   : > { %s1657_s5 = smov 128   ;;  %s1659_s6 = smov 8  }
  0x1f   : > { %s1669_s2 = sld [smem:[#allocation16_spill]]  ;;  %p44_p2 = scmp.ge.s32.totalorder %s42_s29, 2 }
  0x20   : > { %s51_s9 = sadd.s32 1, %s1336_s17  ;;  %p58_p6 = scmp.ne.s32.totalorder %s1336_s17, %s1332_s16 }
  0x21   : > { %p59_p9 = scmp.eq.s32.totalorder %s1348_s20, 0  ;;  %s1685_s29 = smov (%p44_p2, %s42_s29), 0 }
  0x22   : > { %1670 = sst [smem:[#allocation15_spill]] %s1685_s29  ;;  %p1672_p13 = scmp.eq.s32.totalorder %s1414_s21, 1 }
  0x23   : > { %p1463_p12 = por %p59_p9, %p58_p6  ;;  %s46_s12 = ssub.s32 %s1344_s19, %s1685_s29 }
  0x24   : > { %p1469_p0 = por %p1672_p13, %p58_p6  ;;  %p1122_p3 = scmp.lt.s32.totalorder %s1348_s20, 2 }
  0x25   : > { %1109 = dma.hbm_to_vmem [thread:$0]  (!%p1442_p11), %s1669_s2, 2048, %s188_s27, [#allocation7], %s1657_s5, %s1657_s5, %s1659_s6  }
  0x26   : > { %p49_p11 = scmp.eq.s32.totalorder %s46_s12, 0  ;;  %s204_s13 = sand.u32 1, %s1336_s17  }
  0x27   : > { %s900_s14 = sshll.u32 %s204_s13, 7  ;;  %s917_s26 = sshll.u32 %s1344_s19, 11 }
  0x28   : > { %s1478_s22 = scalar_select %p49_p11, %s1336_s17, %s51_s9  }
  0x29   : > { %s216_s30 = scalar_lea.hbm %s1652_s0, %s917_s26  ;;  %s208_s7 = scalar_lea.vmem [#allocation3], %s900_s14 }
  0x2a   : > { %s217_s8 = sshll.u32 %s208_s7, 4  ;;  %p1486_p5 = pnand %p1122_p3, %p1463_p12  ;;  %s218_s8 = int_to_ptr.vmem [resolvable:$true] %s217_s8 }
  0x2b   : > { %s1493_s9 = scalar_lea.hbm %s1653_s1, %s917_s26  ;;  %s231_s12 = scalar_lea.vmem [#allocation6], %s900_s14 }
  0x2c   : > { %s241_s29 = sshll.u32 %s231_s12, 4  ;;  %s205_s19 = scalar_lea.sflag [#allocation4], %s204_s13  ;;  %s242_s29 = int_to_ptr.vmem [resolvable:$true] %s241_s29 }
  0x2d   : > { %p1206_p7 = pneg %p1486_p5  ;;  %s1217_s27 = scalar_lea.vmem %s218_s8, 2048 }
  0x2e   : > { %p1218_p2 = scmp.ne.s32.totalorder %s218_s8, %s1217_s27  ;;  %s1353_s10 = smov [#allocation3]  }
  0x2f   : > { %s1222_s28 = sshll.u32 %s1353_s10, 4  ;;  %s1223_s28 = int_to_ptr.vmem [resolvable:$false] %s1222_s28 }
  0x30   : > { %p1220_p6 = pnand %p1218_p2, %p1206_p7  ;;  %s1224_s7 = scalar_lea.vmem %s1223_s28, 4096 }
  0x31   : > { %p1225_p12 = scmp.lt.s32.totalorder %s218_s8, %s1223_s28  ;;  %p1226_p13 = scmp.lt.s32.totalorder %s1224_s7, %s1217_s27 }
  0x32   : > { %p1221_p9 = pneg %p1220_p6 }
  0x33   : > { %p1227_p3 = por %p1226_p13, %p1225_p12 }
  0x35   : > { %p1228_p11 = pnand %p1227_p3, %p1221_p9 }
  0x37   : > { %1231 = shalt.err (!%p1228_p11)
}
  0x38   : > { %s1675_s2 = smov 8   ;;  %s1676_s6 = smov 128  }
  0x39   : > { %1113 = dma.hbm_to_vmem [thread:$0]  (!%p1486_p5), %s216_s30, 2048, %s218_s8, %s205_s19, %s1676_s6, %s1676_s6, %s1675_s2  }
  0x3a   : > { %s227_s13 = sand.u32 1, %s1348_s20   ;;  %s1245_s26 = scalar_lea.vmem %s242_s29, 2048 }
  0x3b   : > { %s228_s14 = scalar_lea.sflag [#allocation7], %s227_s13  ;;  %p1246_p2 = scmp.ne.s32.totalorder %s242_s29, %s1245_s26 }
  0x3c   : > { %s1354_s12 = smov [#allocation6]  }
  0x3d   : > { %p1248_p6 = pnand %p1246_p2, %p1206_p7  ;;  %s1250_s27 = sshll.u32 %s1354_s12, 4  ;;  %s1251_s27 = int_to_ptr.vmem [resolvable:$false] %s1250_s27 }
  0x3e   : > { %s1252_s10 = scalar_lea.vmem %s1251_s27, 4096  ;;  %p1253_p9 = scmp.lt.s32.totalorder %s242_s29, %s1251_s27 }
  0x3f   : > { %p1249_p10 = pneg %p1248_p6  ;;  %p1254_p12 = scmp.lt.s32.totalorder %s1252_s10, %s1245_s26 }
  0x41   : > { %p1255_p13 = por %p1254_p12, %p1253_p9 }
  0x43   : > { %p1256_p3 = pnand %p1255_p13, %p1249_p10 }
  0x45   : > { %1259 = shalt.err (!%p1256_p3)
}
  0x46   : > { %1116 = dma.hbm_to_vmem [thread:$0]  (!%p1486_p5), %s1493_s9, 2048, %s242_s29, %s228_s14, %s1676_s6, %s1676_s6, %s1675_s2  }
  0x47   : > { %253 = sbr.rel (%p1433_p8) target bundleno = 550 (0x226), region = 36  ;;  %s1518_s19 = sand.u32 (!%p1433_p8), 1, %s1332_s16  }
  0x48   : > { %s1521_s30 = sshll.u32 (!%p1433_p8), %s1518_s19, 7  ;;  %s256_s8 = scalar_lea.sflag (!%p1433_p8), [#allocation4], %s1518_s19 }
  0x49   : > { %s1525_s28 = scalar_lea.vmem (!%p1433_p8), [#allocation3], %s1521_s30 }
  0x4c   : > { %1311 = dma.done.wait (%p1423_p4), %s256_s8, 2048  }
  0x4d   : > { %1313 = vsyncadd (%p1423_p4), %s256_s8, 4294965248  ;;  %s264_s25 = sand.u32 1, %s1414_s21   ;;  %s1533_s5 = scalar_lea.vmem [#allocation6], %s1521_s30 }
  0x4e   : > { %s265_s29 = scalar_lea.sflag [#allocation7], %s264_s25 }
  0x4f   : > { %1315 = dma.done.wait (%p1423_p4), %s265_s29, 2048  }
  0x50   : > { %1317 = vsyncadd (%p1423_p4), %s265_s29, 4294965248 }
  0x51   : > { %1319 = dma.done.wait (%p65_p1), [#allocation7], 2048  }
  0x52   : > { %1321 = vsyncadd (%p65_p1), [#allocation7], 4294965248  ;;  %v372_v0 = vld [vmem:[%s1525_s28 + $0x78] sm:$0xff]  ;;  %v371_v1 = vld [vmem:[%s1525_s28 + $0x70] sm:$0xff]  ;;  %s1579_s9 = scalar_lea.vmem [#allocation9], %s1521_s30  ;;  %s919_s7 = sshll.u32 %s1340_s18, 11 }
  0x53   : > { %984 = vmatprep.subr.mxu0 %v372_v0  ;;  %v370_v2 = vld [vmem:[%s1525_s28 + $0x68] sm:$0xff]  ;;  %v369_v3 = vld [vmem:[%s1525_s28 + $0x60] sm:$0xff]  ;;  %v368_v5 = vld [vmem:[%s1525_s28 + $0x58] sm:$0xff]  ;;  %s769_s2 = sshll.u32 %s1579_s9, 4  ;;  %s1600_s14 = scalar_lea.hbm %s1656_s4, %s919_s7  ;;  %s1602_s2 = int_to_ptr.vmem [resolvable:$true] %s769_s2 }
  0x54   : > { %985 = vmatpush3.msra.mxu0 %v372_v0  ;;  %v341_v4 = vld [vmem:[%s1533_s5] sm:$0xff]  ;;  %v367_v6 = vld [vmem:[%s1525_s28 + $0x50] sm:$0xff]  ;;  %v366_v7 = vld [vmem:[%s1525_s28 + $0x48] sm:$0xff]  ;;  %s754_s26 = scalar_lea.sflag [#allocation5], %s1518_s19  ;;  %s1260_s18 = scalar_lea.vmem %s1602_s2, 2048 }
  0x55   : > { %986 = vmatprep.subr.mxu0 %v371_v1  ;;  %1016 = vmatprep.mubr.f32.mxu0 %v341_v4  ;;  %v584_v8 = vld [vmem:[#allocation8 + $0x78] sm:$0xff]  ;;  %v583_v9 = vld [vmem:[#allocation8 + $0x70] sm:$0xff]  ;;  %v365_v10 = vld [vmem:[%s1525_s28 + $0x40] sm:$0xff]  ;;  %p1261_p1 = scmp.ne.s32.totalorder %s1602_s2, %s1260_s18  ;;  %s1355_s12 = smov [#allocation9]  }
  0x56   : > { %987 = vmatpush3.msra.mxu0 %v371_v1  ;;  %1040 = vmatprep.subr.mxu1 %v584_v8  ;;  %v582_v11 = vld [vmem:[#allocation8 + $0x68] sm:$0xff]  ;;  %v364_v12 = vld [vmem:[%s1525_s28 + $0x38] sm:$0xff]  ;;  %v581_v13 = vld [vmem:[#allocation8 + $0x60] sm:$0xff]  ;;  %s1264_s27 = sshll.u32 %s1355_s12, 4  ;;  %s1265_s27 = int_to_ptr.vmem [resolvable:$false] %s1264_s27 }
  0x57   : > { %988 = vmatprep.subr.mxu0 %v370_v2  ;;  %1041 = vmatpush3.msra.mxu1 %v584_v8  ;;  %v363_v14 = vld [vmem:[%s1525_s28 + $0x30] sm:$0xff]  ;;  %v580_v15 = vld [vmem:[#allocation8 + $0x58] sm:$0xff]  ;;  %v362_v16 = vld [vmem:[%s1525_s28 + $0x28] sm:$0xff]  ;;  %p1262_p4 = pnand %p1261_p1, %p1469_p0  ;;  %s1266_s10 = scalar_lea.vmem %s1265_s27, 4096 }
  0x58   : > { %989 = vmatpush3.msra.mxu0 %v370_v2  ;;  %1042 = vmatprep.subr.mxu1 %v583_v9  ;;  %v579_v17 = vld [vmem:[#allocation8 + $0x50] sm:$0xff]  ;;  %v361_v18 = vld [vmem:[%s1525_s28 + $0x20] sm:$0xff]  ;;  %v578_v19 = vld [vmem:[#allocation8 + $0x48] sm:$0xff]  ;;  %p1267_p10 = scmp.lt.s32.totalorder %s1602_s2, %s1265_s27  ;;  %p1268_p5 = scmp.lt.s32.totalorder %s1266_s10, %s1260_s18 }
  0x59   : > { %990 = vmatprep.subr.mxu0 %v369_v3  ;;  %1043 = vmatpush3.msra.mxu1 %v583_v9  ;;  %v360_v20 = vld [vmem:[%s1525_s28 + $0x18] sm:$0xff]  ;;  %v577_v21 = vld [vmem:[#allocation8 + $0x40] sm:$0xff]  ;;  %v359_v22 = vld [vmem:[%s1525_s28 + $0x10] sm:$0xff]  ;;  %p1263_p8 = pneg %p1262_p4 }
  0x5a   : > { %991 = vmatpush3.msra.mxu0 %v369_v3  ;;  %1044 = vmatprep.subr.mxu1 %v582_v11  ;;  %v576_v23 = vld [vmem:[#allocation8 + $0x38] sm:$0xff]  ;;  %v358_v24 = vld [vmem:[%s1525_s28 + $0x8] sm:$0xff]  ;;  %v575_v25 = vld [vmem:[#allocation8 + $0x30] sm:$0xff]  ;;  %p1269_p7 = por %p1268_p5, %p1267_p10 }
  0x5b   : > { %992 = vmatprep.subr.mxu0 %v368_v5  ;;  %1045 = vmatpush3.msra.mxu1 %v582_v11  ;;  %v357_v26 = vld [vmem:[%s1525_s28] sm:$0xff]  ;;  %v574_v27 = vld [vmem:[#allocation8 + $0x28] sm:$0xff]  ;;  %v343_v30 = vld [vmem:[%s1533_s5 + $0x10] sm:$0xff] }
  0x5c   : > { %993 = vmatpush3.msra.mxu0 %v368_v5  ;;  %1046 = vmatprep.subr.mxu1 %v581_v13  ;;  %v342_v28 = vld [vmem:[%s1533_s5 + $0x8] sm:$0xff]  ;;  %v573_v29 = vld [vmem:[#allocation8 + $0x20] sm:$0xff]  ;;  %v572_v31 = vld [vmem:[#allocation8 + $0x18] sm:$0xff]  ;;  %p1270_p11 = pnand %p1269_p7, %p1263_p8 }
  0x5d   : > { %994 = vmatprep.subr.mxu0 %v367_v6  ;;  %1047 = vmatpush3.msra.mxu1 %v581_v13  ;;  %v344_v32 = vld [vmem:[%s1533_s5 + $0x18] sm:$0xff]  ;;  %v571_v33 = vld [vmem:[#allocation8 + $0x10] sm:$0xff]  ;;  %v345_v34 = vld [vmem:[%s1533_s5 + $0x20] sm:$0xff] }
  0x5e   : > { %995 = vmatpush3.msra.mxu0 %v367_v6  ;;  %1048 = vmatprep.subr.mxu1 %v580_v15  ;;  %v346_v35 = vld [vmem:[%s1533_s5 + $0x28] sm:$0xff]  ;;  %v347_v36 = vld [vmem:[%s1533_s5 + $0x30] sm:$0xff]  ;;  %v348_v37 = vld [vmem:[%s1533_s5 + $0x38] sm:$0xff] }
  0x5f   : > { %996 = vmatprep.subr.mxu0 %v366_v7  ;;  %1049 = vmatpush3.msra.mxu1 %v580_v15  ;;  %v349_v38 = vld [vmem:[%s1533_s5 + $0x40] sm:$0xff]  ;;  %v350_v39 = vld [vmem:[%s1533_s5 + $0x48] sm:$0xff]  ;;  %v351_v40 = vld [vmem:[%s1533_s5 + $0x50] sm:$0xff] }
  0x60   : > { %997 = vmatpush3.msra.mxu0 %v366_v7  ;;  %1050 = vmatprep.subr.mxu1 %v579_v17  ;;  %v352_v41 = vld [vmem:[%s1533_s5 + $0x58] sm:$0xff]  ;;  %v353_v42 = vld [vmem:[%s1533_s5 + $0x60] sm:$0xff]  ;;  %v354_v43 = vld [vmem:[%s1533_s5 + $0x68] sm:$0xff] }
  0x61   : > { %998 = vmatprep.subr.mxu0 %v365_v10  ;;  %1051 = vmatpush3.msra.mxu1 %v579_v17  ;;  %v355_v44 = vld [vmem:[%s1533_s5 + $0x70] sm:$0xff]  ;;  %v356_v45 = vld [vmem:[%s1533_s5 + $0x78] sm:$0xff]  ;;  %v570_v46 = vld [vmem:[#allocation8 + $0x8] sm:$0xff] }
  0x62   : > { %999 = vmatpush3.msra.mxu0 %v365_v10  ;;  %1052 = vmatprep.subr.mxu1 %v578_v19  ;;  %v569_v47 = vld [vmem:[#allocation8] sm:$0xff] }
  0x63   : > { %1000 = vmatprep.subr.mxu0 %v364_v12  ;;  %1053 = vmatpush3.msra.mxu1 %v578_v19  ;;  %v911_v0 = vld [vmem:[%s1655_s3] ss:$0 sm:$0xff] }
  0x64   : > { %1001 = vmatpush3.msra.mxu0 %v364_v12  ;;  %1054 = vmatprep.subr.mxu1 %v577_v21 }
  0x65   : > { %1002 = vmatprep.subr.mxu0 %v363_v14  ;;  %1055 = vmatpush3.msra.mxu1 %v577_v21 }
  0x66   : > { %1003 = vmatpush3.msra.mxu0 %v363_v14  ;;  %1056 = vmatprep.subr.mxu1 %v576_v23 }
  0x67   : > { %1004 = vmatprep.subr.mxu0 %v362_v16  ;;  %1057 = vmatpush3.msra.mxu1 %v576_v23 }
  0x68   : > { %1005 = vmatpush3.msra.mxu0 %v362_v16  ;;  %1058 = vmatprep.subr.mxu1 %v575_v25 }
  0x69   : > { %1006 = vmatprep.subr.mxu0 %v361_v18  ;;  %1059 = vmatpush3.msra.mxu1 %v575_v25 }
  0x6a   : > { %1007 = vmatpush3.msra.mxu0 %v361_v18  ;;  %1060 = vmatprep.subr.mxu1 %v574_v27 }
  0x6b   : > { %1008 = vmatprep.subr.mxu0 %v360_v20  ;;  %1061 = vmatpush3.msra.mxu1 %v574_v27 }
  0x6c   : > { %1009 = vmatpush3.msra.mxu0 %v360_v20  ;;  %1062 = vmatprep.subr.mxu1 %v573_v29 }
  0x6d   : > { %1010 = vmatprep.subr.mxu0 %v359_v22  ;;  %1063 = vmatpush3.msra.mxu1 %v573_v29 }
  0x6e   : > { %1011 = vmatpush3.msra.mxu0 %v359_v22  ;;  %1064 = vmatprep.subr.mxu1 %v572_v31 }
  0x6f   : > { %1012 = vmatprep.subr.mxu0 %v358_v24  ;;  %1065 = vmatpush3.msra.mxu1 %v572_v31 }
  0x70   : > { %1013 = vmatpush3.msra.mxu0 %v358_v24  ;;  %1066 = vmatprep.subr.mxu1 %v571_v33 }
  0x71   : > { %1014 = vmatprep.subr.mxu0 %v357_v26  ;;  %1067 = vmatpush3.msra.mxu1 %v571_v33 }
  0x72   : > { %1015 = vmatpush3.msra.mxu0 %v357_v26  ;;  %1068 = vmatprep.subr.mxu1 %v570_v46 }
  0x73   : > { %1017 = vmatmul.mubr.f32.vlgmr.msra.gmra.mxu0 %v342_v28  ;;  %1069 = vmatpush3.msra.mxu1 %v570_v46 }
  0x74   : > { %1019 = vmatprep.mubr.f32.mxu0 %v343_v30  ;;  %1070 = vmatprep.subr.mxu1 %v569_v47 }
  0x75   : > { %1071 = vmatpush3.msra.mxu1 %v569_v47 }
  0x77   : > { %1020 = vmatmul.mubr.f32.gmra.mxu0 %v344_v32 }
  0x78   : > { %1022 = vmatprep.mubr.f32.mxu0 %v345_v34 }
  0x7b   : > { %1023 = vmatmul.mubr.f32.gmra.mxu0 %v346_v35 }
  0x7c   : > { %1025 = vmatprep.mubr.f32.mxu0 %v347_v36 }
  0x7f   : > { %1026 = vmatmul.mubr.f32.gmra.mxu0 %v348_v37 }
  0x80   : > { %1028 = vmatprep.mubr.f32.mxu0 %v349_v38 }
  0x83   : > { %1029 = vmatmul.mubr.f32.gmra.mxu0 %v350_v39 }
  0x84   : > { %1031 = vmatprep.mubr.f32.mxu0 %v351_v40 }
  0x87   : > { %1032 = vmatmul.mubr.f32.gmra.mxu0 %v352_v41 }
  0x88   : > { %1034 = vmatprep.mubr.f32.mxu0 %v353_v42 }
  0x8b   : > { %1035 = vmatmul.mubr.f32.gmra.mxu0 %v354_v43 }
  0x8c   : > { %1037 = vmatprep.mubr.f32.mxu0 %v355_v44 }
  0x8f   : > { %1038 = vmatmul.mubr.f32.gmra.mxu0 %v356_v45 }
 0x133   : > { %v1018_v48 = vpop.f32.mrf.mxu0 }
 0x135   : > { %v439_v49 = vpop.f32.mrf.mxu0 }
 0x136   : > { %1072 = vmatprep.mubr.f32.mxu1 %v439_v49 }
 0x137   : > { %v1021_v50 = vpop.f32.mrf.mxu0  ;;  %1073 = vmatmul.mubr.f32.vlgmr.msra.gmra.mxu1 %v1018_v48 }
 0x139   : > { %v449_v51 = vpop.f32.mrf.mxu0 }
 0x13a   : > { %1075 = vmatprep.mubr.f32.mxu1 %v449_v51 }
 0x13b   : > { %v1024_v52 = vpop.f32.mrf.mxu0  ;;  %1076 = vmatmul.mubr.f32.gmra.mxu1 %v1021_v50 }
 0x13d   : > { %v459_v53 = vpop.f32.mrf.mxu0 }
 0x13e   : > { %1078 = vmatprep.mubr.f32.mxu1 %v459_v53 }
 0x13f   : > { %v1027_v54 = vpop.f32.mrf.mxu0  ;;  %1079 = vmatmul.mubr.f32.gmra.mxu1 %v1024_v52 }
 0x141   : > { %v469_v55 = vpop.f32.mrf.mxu0 }
 0x142   : > { %1081 = vmatprep.mubr.f32.mxu1 %v469_v55 }
 0x143   : > { %v1030_v56 = vpop.f32.mrf.mxu0  ;;  %1082 = vmatmul.mubr.f32.gmra.mxu1 %v1027_v54 }
 0x145   : > { %v479_v57 = vpop.f32.mrf.mxu0 }
 0x146   : > { %1084 = vmatprep.mubr.f32.mxu1 %v479_v57 }
 0x147   : > { %v1033_v58 = vpop.f32.mrf.mxu0  ;;  %1085 = vmatmul.mubr.f32.gmra.mxu1 %v1030_v56 }
 0x149   : > { %v489_v59 = vpop.f32.mrf.mxu0 }
 0x14a   : > { %1087 = vmatprep.mubr.f32.mxu1 %v489_v59 }
 0x14b   : > { %v1036_v60 = vpop.f32.mrf.mxu0  ;;  %1088 = vmatmul.mubr.f32.gmra.mxu1 %v1033_v58 }
 0x14d   : > { %v499_v61 = vpop.f32.mrf.mxu0 }
 0x14e   : > { %1090 = vmatprep.mubr.f32.mxu1 %v499_v61 }
 0x14f   : > { %v1039_v62 = vpop.f32.mrf.mxu0  ;;  %1091 = vmatmul.mubr.f32.gmra.mxu1 %v1036_v60 }
 0x151   : > { %v509_v63 = vpop.f32.mrf.mxu0 }
 0x152   : > { %1093 = vmatprep.mubr.f32.mxu1 %v509_v63 }
 0x153   : > { %1094 = vmatmul.mubr.f32.gmra.mxu1 %v1039_v62 }
 0x1f7   : > { %v1074_v1 = vpop.f32.mrf.mxu1 }
 0x1f8   : > { %v664_v2 = vadd.f32 %v1074_v1, %v911_v0 }
 0x1f9   : > { %v658_v3 = vpop.f32.mrf.mxu1 }
 0x1fa   : > { %738 = vst [vmem:[%s1579_s9 + $0x8] sm:$0xff] %v664_v2  ;;  %v659_v4 = vadd.f32 %v911_v0, %v658_v3 }
 0x1fb   : > { %v1077_v5 = vpop.f32.mrf.mxu1 }
 0x1fc   : > { %737 = vst [vmem:[%s1579_s9] sm:$0xff] %v659_v4  ;;  %v674_v6 = vadd.f32 %v1077_v5, %v911_v0 }
 0x1fd   : > { %v668_v7 = vpop.f32.mrf.mxu1 }
 0x1fe   : > { %740 = vst [vmem:[%s1579_s9 + $0x18] sm:$0xff] %v674_v6  ;;  %v669_v8 = vadd.f32 %v911_v0, %v668_v7 }
 0x1ff   : > { %v1080_v9 = vpop.f32.mrf.mxu1 }
 0x200   : > { %739 = vst [vmem:[%s1579_s9 + $0x10] sm:$0xff] %v669_v8  ;;  %v684_v10 = vadd.f32 %v1080_v9, %v911_v0 }
 0x201   : > { %v678_v11 = vpop.f32.mrf.mxu1 }
 0x202   : > { %742 = vst [vmem:[%s1579_s9 + $0x28] sm:$0xff] %v684_v10  ;;  %v679_v12 = vadd.f32 %v911_v0, %v678_v11 }
 0x203   : > { %v1083_v13 = vpop.f32.mrf.mxu1 }
 0x204   : > { %741 = vst [vmem:[%s1579_s9 + $0x20] sm:$0xff] %v679_v12  ;;  %v694_v14 = vadd.f32 %v1083_v13, %v911_v0 }
 0x205   : > { %v688_v15 = vpop.f32.mrf.mxu1 }
 0x206   : > { %744 = vst [vmem:[%s1579_s9 + $0x38] sm:$0xff] %v694_v14  ;;  %v689_v16 = vadd.f32 %v911_v0, %v688_v15 }
 0x207   : > { %v1086_v17 = vpop.f32.mrf.mxu1 }
 0x208   : > { %743 = vst [vmem:[%s1579_s9 + $0x30] sm:$0xff] %v689_v16  ;;  %v704_v18 = vadd.f32 %v1086_v17, %v911_v0 }
 0x209   : > { %v698_v19 = vpop.f32.mrf.mxu1 }
 0x20a   : > { %746 = vst [vmem:[%s1579_s9 + $0x48] sm:$0xff] %v704_v18  ;;  %v699_v20 = vadd.f32 %v911_v0, %v698_v19 }
 0x20b   : > { %v1089_v21 = vpop.f32.mrf.mxu1 }
 0x20c   : > { %745 = vst [vmem:[%s1579_s9 + $0x40] sm:$0xff] %v699_v20  ;;  %v714_v22 = vadd.f32 %v1089_v21, %v911_v0 }
 0x20d   : > { %v708_v23 = vpop.f32.mrf.mxu1 }
 0x20e   : > { %748 = vst [vmem:[%s1579_s9 + $0x58] sm:$0xff] %v714_v22  ;;  %v709_v24 = vadd.f32 %v911_v0, %v708_v23 }
 0x20f   : > { %v1092_v25 = vpop.f32.mrf.mxu1 }
 0x210   : > { %747 = vst [vmem:[%s1579_s9 + $0x50] sm:$0xff] %v709_v24  ;;  %v724_v26 = vadd.f32 %v1092_v25, %v911_v0 }
 0x211   : > { %v718_v27 = vpop.f32.mrf.mxu1 }
 0x212   : > { %750 = vst [vmem:[%s1579_s9 + $0x68] sm:$0xff] %v724_v26  ;;  %v719_v28 = vadd.f32 %v911_v0, %v718_v27 }
 0x213   : > { %v1095_v29 = vpop.f32.mrf.mxu1 }
 0x214   : > { %749 = vst [vmem:[%s1579_s9 + $0x60] sm:$0xff] %v719_v28  ;;  %v734_v30 = vadd.f32 %v1095_v29, %v911_v0 }
 0x215   : > { %v728_v31 = vpop.f32.mrf.mxu1 }
 0x216   : > { %752 = vst [vmem:[%s1579_s9 + $0x78] sm:$0xff] %v734_v30  ;;  %v729_v32 = vadd.f32 %v911_v0, %v728_v31 }
 0x218   : > { %751 = vst [vmem:[%s1579_s9 + $0x70] sm:$0xff] %v729_v32 }
 0x219   : > { %1273 = shalt.err (!%p1270_p11)
}
 0x21a   : > { %s1274_s30 = scalar_lea.hbm %s1600_s14, 2048  ;;  %s1278_s25 = scalar_lea.hbm %s1656_s4, 4096 }
 0x21b   : > { %p1275_p2 = scmp.ne.s32.totalorder %s1600_s14, %s1274_s30  ;;  %p1279_p12 = scmp.lt.s32.totalorder %s1600_s14, %s1656_s4 }
 0x21c   : > { %p1280_p13 = scmp.lt.s32.totalorder %s1278_s25, %s1274_s30 }
 0x21d   : > { %p1276_p6 = pnand %p1275_p2, %p1469_p0 }
 0x21e   : > { %p1281_p3 = por %p1280_p13, %p1279_p12 }
 0x21f   : > { %p1277_p9 = pneg %p1276_p6 }
 0x221   : > { %p1282_p1 = pnand %p1281_p3, %p1277_p9 }
 0x223   : > { %1285 = shalt.err (!%p1282_p1)
}
 0x224   : > { %s1356_s21 = smov 128   ;;  %s1357_s23 = smov 8  }
 0x225   : > { %1104 = dma.vmem_to_hbm [thread:$0]  (%p1469_p0), %s1602_s2, 2048, %s1600_s14, %s754_s26, %s1356_s21, %s1356_s21, %s1357_s23  }
 0x226 PF: > { %s784_s9 = sand.u32 1, %s1328_s15   ;;  %p1677_p4 = scmp.ne.s32.totalorder %s1666_s24, 0 }
 0x227   : > { %p1678_p8 = scmp.ge.s32.totalorder %s1348_s20, 2  ;;  %s785_s7 = scalar_lea.sflag [#allocation5], %s784_s9 }
 0x229   : > { %p1118_p10 = pnand %p1678_p8, %p1677_p4 }
 0x22b   : > { %p1119_p5 = pneg %p1118_p10 }
 0x22d   : > { %1323 = dma.done.wait (%p1119_p5), %s785_s7, 2048  }
 0x22e   : > { %1325 = vsyncadd (%p1119_p5), %s785_s7, 4294965248  ;;  %s23_s20 = sadd.s32 1, %s1348_s20   ;;  %s1679_s18 = sld [smem:[#allocation14_spill]] }
 0x22f   : > { %p20_p7 = scmp.ge.s32.totalorder %s23_s20, 4   ;;  %s1680_s19 = sld [smem:[#allocation15_spill]] }
 0x230   : > { %s1681_s15 = smov %s1332_s16  ;;  %s1682_s16 = smov %s1336_s17 }
 0x231   : > { %s1683_s17 = smov %s1478_s22  ;;  %22 = sbr.rel (!%p20_p7) target bundleno = 10 (0xa), region = 106 }
 0x236   :  { %790 = vsyncpa [#allocation4], 1 }
 0x237   :  { %792 = vsyncpa [#allocation4 + $0x1], 1 }
 0x238   :  { %793 = vsyncpa [#allocation7], 1 }
 0x239   :  { %795 = vsyncpa [#allocation7 + $0x1], 1 }
 0x23a   :  { %796 = vsyncpa [#allocation5], 1 }
 0x23b   :  { %798 = vsyncpa [#allocation5 + $0x1], 1 }

</bundles_post_ra>
